<compile_context>
chip_gen: v7x
topology: tpu7x:2x2x1
jax: 0.10.0
libtpu: 0.0.40
codegen_flags: <defaults>
</compile_context>

<pallas_src>
import numpy as np
import jax
import jax.numpy as jnp
from jax import lax
from jax.experimental import pallas as pl
from jax.experimental.pallas import tpu as pltpu

INPUT_DIM = 8
HIDDEN_DIM = 32

_GELU_K0 = 0.7978845608028654     # sqrt(2/pi)
_GELU_K1 = 0.044715
_NEG_INF = -1e30
_LEAKY_SLOPE = 0.2                # GATConv default negative_slope


def _full_spec(shape):
    nd = len(shape)
    return pl.BlockSpec(shape, lambda i, nd=nd: (0,) * nd)


def _gelu_tanh(x):
    # EUP tanh + a handful of VALU ops; max abs deviation from exact-erf GELU ~3e-3.
    return 0.5 * x * (1.0 + jnp.tanh(_GELU_K0 * (x + _GELU_K1 * x * x * x)))


def _gat_layer(h, c, neg_mask, w_ref, att_src_ref, att_dst_ref, bias_ref):
    # Feature transform (MXU): bf16 inputs, f32 accumulate.
    hp = jnp.dot(h.astype(jnp.bfloat16), w_ref[...].astype(jnp.bfloat16),
                 preferred_element_type=jnp.float32)                     # [N, Fo]

    # Attention coefficients in f32.
    #   a_dst[i] = sum_f hp[i, f] * att_dst[f]          -> [N, 1] (VPU mul + XLU reduce)
    #   a_src[j] = sum_f hp[j, f] * att_src[f] as [1, N] -> lane-dense via NT matmul
    a_dst = jnp.sum(hp * att_dst_ref[...], axis=-1, keepdims=True)       # [N, 1]
    a_src = lax.dot_general(att_src_ref[...], hp,
                            dimension_numbers=(((1,), (1,)), ((), ())),
                            preferred_element_type=jnp.float32)          # [1, N]

    # e[i, j] = leaky_relu(a_dst[i] + a_src[j]);  softmax over incoming edges of i.
    e = a_dst + a_src                                                    # [N, N]
    e = jnp.where(e >= 0.0, e, _LEAKY_SLOPE * e)
    logits = e + neg_mask
    m = jnp.max(logits, axis=-1, keepdims=True)
    wgt = c * jnp.exp(logits - m)          # edge multiplicity folded into softmax
    alpha = wgt * pl.reciprocal(jnp.sum(wgt, axis=-1, keepdims=True), approx=True)

    # Aggregate messages (MXU, bf16 in / f32 out), add bias, GELU.
    out = jnp.dot(alpha.astype(jnp.bfloat16), hp.astype(jnp.bfloat16),
                  preferred_element_type=jnp.float32) + bias_ref[...]
    return _gelu_tanh(out)


def _gat3_kernel(c_ref, x_ref,
                 w1_ref, as1_ref, ad1_ref, b1_ref,
                 w2_ref, as2_ref, ad2_ref, b2_ref,
                 w3_ref, as3_ref, ad3_ref, b3_ref,
                 out_ref):
    c = c_ref[...]                                   # [N, N] edge counts (j -> i)
    neg_mask = jnp.where(c > 0.0, 0.0, _NEG_INF)     # additive softmax mask (hoisted)
    h = x_ref[...]
    h = _gat_layer(h, c, neg_mask, w1_ref, as1_ref, ad1_ref, b1_ref)
    h = _gat_layer(h, c, neg_mask, w2_ref, as2_ref, ad2_ref, b2_ref)
    h = _gat_layer(h, c, neg_mask, w3_ref, as3_ref, ad3_ref, b3_ref)
    out_ref[...] = h


def build_edge_count_matrix(edge_index, num_nodes):
    """C[i, j] = #edges j->i after remove_self_loops + add_self_loops (GATConv default)."""
    src = np.asarray(edge_index[0])
    dst = np.asarray(edge_index[1])
    keep = src != dst
    c = np.zeros((num_nodes, num_nodes), np.float32)
    np.add.at(c, (dst[keep], src[keep]), 1.0)
    c += np.eye(num_nodes, dtype=np.float32)
    return c


def system_gnn_forward(params, x, edge_index, num_nodes, edge_attr=None):
    # edge_attr is accepted (matching the torch forward signature) but ignored,
    # exactly as GATConv ignores it when edge_dim is not configured.
    del edge_attr
    c = build_edge_count_matrix(edge_index, num_nodes)   # index-only host work
    args = (jnp.asarray(c), jnp.asarray(x, jnp.float32),
            params["w1"], params["att_src1"], params["att_dst1"], params["b1"],
            params["w2"], params["att_src2"], params["att_dst2"], params["b2"],
            params["w3"], params["att_src3"], params["att_dst3"], params["b3"])
    return pl.pallas_call(
        _gat3_kernel,
        out_shape=jax.ShapeDtypeStruct((num_nodes, HIDDEN_DIM), jnp.float32),
        grid=(1,),
        in_specs=[_full_spec(a.shape) for a in args],
        out_specs=_full_spec((num_nodes, HIDDEN_DIM)),
        compiler_params=pltpu.CompilerParams(dimension_semantics=("arbitrary",)),
    )(*args)


# --------------------------- numpy reference -----------------------------------

def reference_forward(params, x, edge_index, num_nodes):
    import math
    erf = np.vectorize(math.erf)
    gelu = lambda v: 0.5 * v * (1.0 + erf(v / math.sqrt(2.0)))
    c = build_edge_count_matrix(edge_index, num_nodes).astype(np.float64)
    h = np.asarray(x, np.float64)
    for l in ("1", "2", "3"):
        w = np.asarray(params["w" + l], np.float64)
        a_s = np.asarray(params["att_src" + l], np.float64)
        a_d = np.asarray(params["att_dst" + l], np.float64)
        b = np.asarray(params["b" + l], np.float64)
        hp = h @ w
        asrc = (hp * a_s).sum(-1)                     # [N]
        adst = (hp * a_d).sum(-1)                     # [N]
        e = adst[:, None] + asrc[None, :]
        e = np.where(e >= 0.0, e, _LEAKY_SLOPE * e)
        e = np.where(c > 0.0, e, -np.inf)
        m = e.max(-1, keepdims=True)
        wgt = c * np.exp(e - m)
        alpha = wgt / wgt.sum(-1, keepdims=True)
        h = gelu(alpha @ hp + b)
    return h


# ----------------------------------- main ---------------------------------------

if __name__ == "__main__":
    key = jax.random.PRNGKey(0)
    ks = jax.random.split(key, 16)
    n_nodes = 16

    params = {
        "w1": jax.random.normal(ks[0], (INPUT_DIM, HIDDEN_DIM), jnp.float32) / np.sqrt(INPUT_DIM),
        "att_src1": 0.25 * jax.random.normal(ks[1], (1, HIDDEN_DIM), jnp.float32),
        "att_dst1": 0.25 * jax.random.normal(ks[2], (1, HIDDEN_DIM), jnp.float32),
        "b1": 0.1 * jax.random.normal(ks[3], (1, HIDDEN_DIM), jnp.float32),
        "w2": jax.random.normal(ks[4], (HIDDEN_DIM, HIDDEN_DIM), jnp.float32) / np.sqrt(HIDDEN_DIM),
        "att_src2": 0.25 * jax.random.normal(ks[5], (1, HIDDEN_DIM), jnp.float32),
        "att_dst2": 0.25 * jax.random.normal(ks[6], (1, HIDDEN_DIM), jnp.float32),
        "b2": 0.1 * jax.random.normal(ks[7], (1, HIDDEN_DIM), jnp.float32),
        "w3": jax.random.normal(ks[8], (HIDDEN_DIM, HIDDEN_DIM), jnp.float32) / np.sqrt(HIDDEN_DIM),
        "att_src3": 0.25 * jax.random.normal(ks[9], (1, HIDDEN_DIM), jnp.float32),
        "att_dst3": 0.25 * jax.random.normal(ks[10], (1, HIDDEN_DIM), jnp.float32),
        "b3": 0.1 * jax.random.normal(ks[11], (1, HIDDEN_DIM), jnp.float32),
    }

    # Node features and a small graph: two bidirectional 8-rings + one chord each.
    x = jax.random.normal(ks[12], (n_nodes, INPUT_DIM), jnp.float32)
    edges = []
    for base in (0, 8):
        for i in range(8):
            s, d = base + i, base + (i + 1) % 8
            edges.append((s, d)); edges.append((d, s))
        edges.append((base, base + 4)); edges.append((base + 4, base))
    edge_index = np.array(edges, dtype=np.int64).T           # [2, 36]
    edge_attr = jax.random.normal(ks[13], (edge_index.shape[1], 4), jnp.float32)
    batch = np.array([0] * 8 + [1] * 8, dtype=np.int64)       # unused by forward()
    del batch

    out = system_gnn_forward(params, x, edge_index, n_nodes, edge_attr=edge_attr)
    out = jax.block_until_ready(out)

    ref = reference_forward(params, x, edge_index, n_nodes)
    np.testing.assert_allclose(np.asarray(out, np.float64), ref, rtol=2e-2, atol=2e-2)
    print("KERNEL_OK")
</pallas_src>

<mosaic_0001>
module attributes {stable_mosaic.version = 11 : i64} {
  func.func @_gat3_kernel(%arg0: i32, %arg1: memref<16x16xf32, #tpu.memory_space<vmem>>, %arg2: memref<16x8xf32, #tpu.memory_space<vmem>>, %arg3: memref<8x32xf32, #tpu.memory_space<vmem>>, %arg4: memref<1x32xf32, #tpu.memory_space<vmem>>, %arg5: memref<1x32xf32, #tpu.memory_space<vmem>>, %arg6: memref<1x32xf32, #tpu.memory_space<vmem>>, %arg7: memref<32x32xf32, #tpu.memory_space<vmem>>, %arg8: memref<1x32xf32, #tpu.memory_space<vmem>>, %arg9: memref<1x32xf32, #tpu.memory_space<vmem>>, %arg10: memref<1x32xf32, #tpu.memory_space<vmem>>, %arg11: memref<32x32xf32, #tpu.memory_space<vmem>>, %arg12: memref<1x32xf32, #tpu.memory_space<vmem>>, %arg13: memref<1x32xf32, #tpu.memory_space<vmem>>, %arg14: memref<1x32xf32, #tpu.memory_space<vmem>>, %arg15: memref<16x32xf32, #tpu.memory_space<vmem>>) attributes {dimension_semantics = [#tpu.dimension_semantics<arbitrary>], iteration_bounds = array<i64: 1>, scalar_prefetch = 0 : i64, scratch_operands = 0 : i64, tpu.core_type = #tpu.core_type<tc>, window_params = [{pipeline_mode = #tpu.pipeline_mode<synchronous>, transform_indices = @transform_0, window_bounds = array<i64: 16, 16>}, {pipeline_mode = #tpu.pipeline_mode<synchronous>, transform_indices = @transform_1, window_bounds = array<i64: 16, 8>}, {pipeline_mode = #tpu.pipeline_mode<synchronous>, transform_indices = @transform_2, window_bounds = array<i64: 8, 32>}, {pipeline_mode = #tpu.pipeline_mode<synchronous>, transform_indices = @transform_3, window_bounds = array<i64: 1, 32>}, {pipeline_mode = #tpu.pipeline_mode<synchronous>, transform_indices = @transform_4, window_bounds = array<i64: 1, 32>}, {pipeline_mode = #tpu.pipeline_mode<synchronous>, transform_indices = @transform_5, window_bounds = array<i64: 1, 32>}, {pipeline_mode = #tpu.pipeline_mode<synchronous>, transform_indices = @transform_6, window_bounds = array<i64: 32, 32>}, {pipeline_mode = #tpu.pipeline_mode<synchronous>, transform_indices = @transform_7, window_bounds = array<i64: 1, 32>}, {pipeline_mode = #tpu.pipeline_mode<synchronous>, transform_indices = @transform_8, window_bounds = array<i64: 1, 32>}, {pipeline_mode = #tpu.pipeline_mode<synchronous>, transform_indices = @transform_9, window_bounds = array<i64: 1, 32>}, {pipeline_mode = #tpu.pipeline_mode<synchronous>, transform_indices = @transform_10, window_bounds = array<i64: 32, 32>}, {pipeline_mode = #tpu.pipeline_mode<synchronous>, transform_indices = @transform_11, window_bounds = array<i64: 1, 32>}, {pipeline_mode = #tpu.pipeline_mode<synchronous>, transform_indices = @transform_12, window_bounds = array<i64: 1, 32>}, {pipeline_mode = #tpu.pipeline_mode<synchronous>, transform_indices = @transform_13, window_bounds = array<i64: 1, 32>}, {pipeline_mode = #tpu.pipeline_mode<synchronous>, transform_indices = @transform_14, window_bounds = array<i64: 16, 32>}]} {
    %c0 = arith.constant 0 : index
    %c0_0 = arith.constant 0 : index
    %0 = vector.load %arg1[%c0, %c0_0] : memref<16x16xf32, #tpu.memory_space<vmem>>, vector<16x16xf32>
    %cst = arith.constant 0.000000e+00 : f32
    %1 = vector.broadcast %cst : f32 to vector<16x16xf32>
    %2 = arith.cmpf ogt, %0, %1 : vector<16x16xf32>
    %cst_1 = arith.constant 0.000000e+00 : f32
    %cst_2 = arith.constant -1.000000e+30 : f32
    %3 = vector.broadcast %cst_1 : f32 to vector<16x16xf32>
    %4 = vector.broadcast %cst_2 : f32 to vector<16x16xf32>
    %5 = arith.select %2, %3, %4 : vector<16x16xi1>, vector<16x16xf32>
    %c0_3 = arith.constant 0 : index
    %c0_4 = arith.constant 0 : index
    %6 = vector.load %arg2[%c0_3, %c0_4] : memref<16x8xf32, #tpu.memory_space<vmem>>, vector<16x8xf32>
    %7 = arith.truncf %6 : vector<16x8xf32> to vector<16x8xbf16>
    %c0_5 = arith.constant 0 : index
    %c0_6 = arith.constant 0 : index
    %8 = vector.load %arg3[%c0_5, %c0_6] : memref<8x32xf32, #tpu.memory_space<vmem>>, vector<8x32xf32>
    %9 = arith.truncf %8 : vector<8x32xf32> to vector<8x32xbf16>
    %cst_7 = arith.constant dense<0.000000e+00> : vector<16x32xf32>
    %10 = tpu.matmul %7, %9, %cst_7 {dimension_numbers = #tpu.dot_dimension_numbers<[1], [0], [0], [1], [0, 0, 1, 1], [], []>} : vector<16x8xbf16>, vector<8x32xbf16>, vector<16x32xf32> -> vector<16x32xf32>
    %c0_8 = arith.constant 0 : index
    %c0_9 = arith.constant 0 : index
    %11 = vector.load %arg5[%c0_8, %c0_9] : memref<1x32xf32, #tpu.memory_space<vmem>>, vector<1x32xf32>
    %12 = vector.broadcast %11 : vector<1x32xf32> to vector<16x32xf32>
    %13 = arith.mulf %10, %12 : vector<16x32xf32>
    %cst_10 = arith.constant dense<0.000000e+00> : vector<16xf32>
    %14 = vector.multi_reduction <add>, %13, %cst_10 [1] : vector<16x32xf32> to vector<16xf32>
    %15 = vector.shape_cast %14 : vector<16xf32> to vector<16x1xf32>
    %c0_11 = arith.constant 0 : index
    %c0_12 = arith.constant 0 : index
    %16 = vector.load %arg4[%c0_11, %c0_12] : memref<1x32xf32, #tpu.memory_space<vmem>>, vector<1x32xf32>
    %cst_13 = arith.constant dense<0.000000e+00> : vector<1x16xf32>
    %17 = tpu.matmul %16, %10, %cst_13 {dimension_numbers = #tpu.dot_dimension_numbers<[1], [1], [0], [0], [0, 0, 1, 0], [], []>} : vector<1x32xf32>, vector<16x32xf32>, vector<1x16xf32> -> vector<1x16xf32>
    %18 = vector.broadcast %15 : vector<16x1xf32> to vector<16x16xf32>
    %19 = vector.broadcast %17 : vector<1x16xf32> to vector<16x16xf32>
    %20 = arith.addf %18, %19 : vector<16x16xf32>
    %cst_14 = arith.constant 0.000000e+00 : f32
    %21 = vector.broadcast %cst_14 : f32 to vector<16x16xf32>
    %22 = arith.cmpf oge, %20, %21 : vector<16x16xf32>
    %cst_15 = arith.constant 2.000000e-01 : f32
    %23 = vector.broadcast %cst_15 : f32 to vector<16x16xf32>
    %24 = arith.mulf %23, %20 : vector<16x16xf32>
    %25 = arith.select %22, %20, %24 : vector<16x16xi1>, vector<16x16xf32>
    %26 = arith.addf %25, %5 : vector<16x16xf32>
    %cst_16 = arith.constant dense<0xFF800000> : vector<16xf32>
    %27 = vector.multi_reduction <maximumf>, %26, %cst_16 [1] : vector<16x16xf32> to vector<16xf32>
    %28 = vector.shape_cast %27 : vector<16xf32> to vector<16x1xf32>
    %29 = vector.broadcast %28 : vector<16x1xf32> to vector<16x16xf32>
    %30 = arith.subf %26, %29 : vector<16x16xf32>
    %31 = math.exp %30 : vector<16x16xf32>
    %32 = arith.mulf %0, %31 : vector<16x16xf32>
    %cst_17 = arith.constant dense<0.000000e+00> : vector<16xf32>
    %33 = vector.multi_reduction <add>, %32, %cst_17 [1] : vector<16x16xf32> to vector<16xf32>
    %34 = vector.shape_cast %33 : vector<16xf32> to vector<16x1xf32>
    %35 = tpu.reciprocal %34 {approx = true} : vector<16x1xf32> -> vector<16x1xf32>
    %36 = vector.broadcast %35 : vector<16x1xf32> to vector<16x16xf32>
    %37 = arith.mulf %32, %36 : vector<16x16xf32>
    %38 = arith.truncf %37 : vector<16x16xf32> to vector<16x16xbf16>
    %39 = arith.truncf %10 : vector<16x32xf32> to vector<16x32xbf16>
    %cst_18 = arith.constant dense<0.000000e+00> : vector<16x32xf32>
    %40 = tpu.matmul %38, %39, %cst_18 {dimension_numbers = #tpu.dot_dimension_numbers<[1], [0], [0], [1], [0, 0, 1, 1], [], []>} : vector<16x16xbf16>, vector<16x32xbf16>, vector<16x32xf32> -> vector<16x32xf32>
    %c0_19 = arith.constant 0 : index
    %c0_20 = arith.constant 0 : index
    %41 = vector.load %arg6[%c0_19, %c0_20] : memref<1x32xf32, #tpu.memory_space<vmem>>, vector<1x32xf32>
    %42 = vector.broadcast %41 : vector<1x32xf32> to vector<16x32xf32>
    %43 = arith.addf %40, %42 : vector<16x32xf32>
    %cst_21 = arith.constant 5.000000e-01 : f32
    %44 = vector.broadcast %cst_21 : f32 to vector<16x32xf32>
    %45 = arith.mulf %44, %43 : vector<16x32xf32>
    %cst_22 = arith.constant 4.471500e-02 : f32
    %46 = vector.broadcast %cst_22 : f32 to vector<16x32xf32>
    %47 = arith.mulf %46, %43 : vector<16x32xf32>
    %48 = arith.mulf %47, %43 : vector<16x32xf32>
    %49 = arith.mulf %48, %43 : vector<16x32xf32>
    %50 = arith.addf %43, %49 : vector<16x32xf32>
    %cst_23 = arith.constant 0.797884583 : f32
    %51 = vector.broadcast %cst_23 : f32 to vector<16x32xf32>
    %52 = arith.mulf %51, %50 : vector<16x32xf32>
    %53 = math.tanh %52 : vector<16x32xf32>
    %cst_24 = arith.constant 1.000000e+00 : f32
    %54 = vector.broadcast %cst_24 : f32 to vector<16x32xf32>
    %55 = arith.addf %54, %53 : vector<16x32xf32>
    %56 = arith.mulf %45, %55 : vector<16x32xf32>
    %57 = arith.truncf %56 : vector<16x32xf32> to vector<16x32xbf16>
    %c0_25 = arith.constant 0 : index
    %c0_26 = arith.constant 0 : index
    %58 = vector.load %arg7[%c0_25, %c0_26] : memref<32x32xf32, #tpu.memory_space<vmem>>, vector<32x32xf32>
    %59 = arith.truncf %58 : vector<32x32xf32> to vector<32x32xbf16>
    %cst_27 = arith.constant dense<0.000000e+00> : vector<16x32xf32>
    %60 = tpu.matmul %57, %59, %cst_27 {dimension_numbers = #tpu.dot_dimension_numbers<[1], [0], [0], [1], [0, 0, 1, 1], [], []>} : vector<16x32xbf16>, vector<32x32xbf16>, vector<16x32xf32> -> vector<16x32xf32>
    %c0_28 = arith.constant 0 : index
    %c0_29 = arith.constant 0 : index
    %61 = vector.load %arg9[%c0_28, %c0_29] : memref<1x32xf32, #tpu.memory_space<vmem>>, vector<1x32xf32>
    %62 = vector.broadcast %61 : vector<1x32xf32> to vector<16x32xf32>
    %63 = arith.mulf %60, %62 : vector<16x32xf32>
    %cst_30 = arith.constant dense<0.000000e+00> : vector<16xf32>
    %64 = vector.multi_reduction <add>, %63, %cst_30 [1] : vector<16x32xf32> to vector<16xf32>
    %65 = vector.shape_cast %64 : vector<16xf32> to vector<16x1xf32>
    %c0_31 = arith.constant 0 : index
    %c0_32 = arith.constant 0 : index
    %66 = vector.load %arg8[%c0_31, %c0_32] : memref<1x32xf32, #tpu.memory_space<vmem>>, vector<1x32xf32>
    %cst_33 = arith.constant dense<0.000000e+00> : vector<1x16xf32>
    %67 = tpu.matmul %66, %60, %cst_33 {dimension_numbers = #tpu.dot_dimension_numbers<[1], [1], [0], [0], [0, 0, 1, 0], [], []>} : vector<1x32xf32>, vector<16x32xf32>, vector<1x16xf32> -> vector<1x16xf32>
    %68 = vector.broadcast %65 : vector<16x1xf32> to vector<16x16xf32>
    %69 = vector.broadcast %67 : vector<1x16xf32> to vector<16x16xf32>
    %70 = arith.addf %68, %69 : vector<16x16xf32>
    %cst_34 = arith.constant 0.000000e+00 : f32
    %71 = vector.broadcast %cst_34 : f32 to vector<16x16xf32>
    %72 = arith.cmpf oge, %70, %71 : vector<16x16xf32>
    %cst_35 = arith.constant 2.000000e-01 : f32
    %73 = vector.broadcast %cst_35 : f32 to vector<16x16xf32>
    %74 = arith.mulf %73, %70 : vector<16x16xf32>
    %75 = arith.select %72, %70, %74 : vector<16x16xi1>, vector<16x16xf32>
    %76 = arith.addf %75, %5 : vector<16x16xf32>
    %cst_36 = arith.constant dense<0xFF800000> : vector<16xf32>
    %77 = vector.multi_reduction <maximumf>, %76, %cst_36 [1] : vector<16x16xf32> to vector<16xf32>
    %78 = vector.shape_cast %77 : vector<16xf32> to vector<16x1xf32>
    %79 = vector.broadcast %78 : vector<16x1xf32> to vector<16x16xf32>
    %80 = arith.subf %76, %79 : vector<16x16xf32>
    %81 = math.exp %80 : vector<16x16xf32>
    %82 = arith.mulf %0, %81 : vector<16x16xf32>
    %cst_37 = arith.constant dense<0.000000e+00> : vector<16xf32>
    %83 = vector.multi_reduction <add>, %82, %cst_37 [1] : vector<16x16xf32> to vector<16xf32>
    %84 = vector.shape_cast %83 : vector<16xf32> to vector<16x1xf32>
    %85 = tpu.reciprocal %84 {approx = true} : vector<16x1xf32> -> vector<16x1xf32>
    %86 = vector.broadcast %85 : vector<16x1xf32> to vector<16x16xf32>
    %87 = arith.mulf %82, %86 : vector<16x16xf32>
    %88 = arith.truncf %87 : vector<16x16xf32> to vector<16x16xbf16>
    %89 = arith.truncf %60 : vector<16x32xf32> to vector<16x32xbf16>
    %cst_38 = arith.constant dense<0.000000e+00> : vector<16x32xf32>
    %90 = tpu.matmul %88, %89, %cst_38 {dimension_numbers = #tpu.dot_dimension_numbers<[1], [0], [0], [1], [0, 0, 1, 1], [], []>} : vector<16x16xbf16>, vector<16x32xbf16>, vector<16x32xf32> -> vector<16x32xf32>
    %c0_39 = arith.constant 0 : index
    %c0_40 = arith.constant 0 : index
    %91 = vector.load %arg10[%c0_39, %c0_40] : memref<1x32xf32, #tpu.memory_space<vmem>>, vector<1x32xf32>
    %92 = vector.broadcast %91 : vector<1x32xf32> to vector<16x32xf32>
    %93 = arith.addf %90, %92 : vector<16x32xf32>
    %cst_41 = arith.constant 5.000000e-01 : f32
    %94 = vector.broadcast %cst_41 : f32 to vector<16x32xf32>
    %95 = arith.mulf %94, %93 : vector<16x32xf32>
    %cst_42 = arith.constant 4.471500e-02 : f32
    %96 = vector.broadcast %cst_42 : f32 to vector<16x32xf32>
    %97 = arith.mulf %96, %93 : vector<16x32xf32>
    %98 = arith.mulf %97, %93 : vector<16x32xf32>
    %99 = arith.mulf %98, %93 : vector<16x32xf32>
    %100 = arith.addf %93, %99 : vector<16x32xf32>
    %cst_43 = arith.constant 0.797884583 : f32
    %101 = vector.broadcast %cst_43 : f32 to vector<16x32xf32>
    %102 = arith.mulf %101, %100 : vector<16x32xf32>
    %103 = math.tanh %102 : vector<16x32xf32>
    %cst_44 = arith.constant 1.000000e+00 : f32
    %104 = vector.broadcast %cst_44 : f32 to vector<16x32xf32>
    %105 = arith.addf %104, %103 : vector<16x32xf32>
    %106 = arith.mulf %95, %105 : vector<16x32xf32>
    %107 = arith.truncf %106 : vector<16x32xf32> to vector<16x32xbf16>
    %c0_45 = arith.constant 0 : index
    %c0_46 = arith.constant 0 : index
    %108 = vector.load %arg11[%c0_45, %c0_46] : memref<32x32xf32, #tpu.memory_space<vmem>>, vector<32x32xf32>
    %109 = arith.truncf %108 : vector<32x32xf32> to vector<32x32xbf16>
    %cst_47 = arith.constant dense<0.000000e+00> : vector<16x32xf32>
    %110 = tpu.matmul %107, %109, %cst_47 {dimension_numbers = #tpu.dot_dimension_numbers<[1], [0], [0], [1], [0, 0, 1, 1], [], []>} : vector<16x32xbf16>, vector<32x32xbf16>, vector<16x32xf32> -> vector<16x32xf32>
    %c0_48 = arith.constant 0 : index
    %c0_49 = arith.constant 0 : index
    %111 = vector.load %arg13[%c0_48, %c0_49] : memref<1x32xf32, #tpu.memory_space<vmem>>, vector<1x32xf32>
    %112 = vector.broadcast %111 : vector<1x32xf32> to vector<16x32xf32>
    %113 = arith.mulf %110, %112 : vector<16x32xf32>
    %cst_50 = arith.constant dense<0.000000e+00> : vector<16xf32>
    %114 = vector.multi_reduction <add>, %113, %cst_50 [1] : vector<16x32xf32> to vector<16xf32>
    %115 = vector.shape_cast %114 : vector<16xf32> to vector<16x1xf32>
    %c0_51 = arith.constant 0 : index
    %c0_52 = arith.constant 0 : index
    %116 = vector.load %arg12[%c0_51, %c0_52] : memref<1x32xf32, #tpu.memory_space<vmem>>, vector<1x32xf32>
    %cst_53 = arith.constant dense<0.000000e+00> : vector<1x16xf32>
    %117 = tpu.matmul %116, %110, %cst_53 {dimension_numbers = #tpu.dot_dimension_numbers<[1], [1], [0], [0], [0, 0, 1, 0], [], []>} : vector<1x32xf32>, vector<16x32xf32>, vector<1x16xf32> -> vector<1x16xf32>
    %118 = vector.broadcast %115 : vector<16x1xf32> to vector<16x16xf32>
    %119 = vector.broadcast %117 : vector<1x16xf32> to vector<16x16xf32>
    %120 = arith.addf %118, %119 : vector<16x16xf32>
    %cst_54 = arith.constant 0.000000e+00 : f32
    %121 = vector.broadcast %cst_54 : f32 to vector<16x16xf32>
    %122 = arith.cmpf oge, %120, %121 : vector<16x16xf32>
    %cst_55 = arith.constant 2.000000e-01 : f32
    %123 = vector.broadcast %cst_55 : f32 to vector<16x16xf32>
    %124 = arith.mulf %123, %120 : vector<16x16xf32>
    %125 = arith.select %122, %120, %124 : vector<16x16xi1>, vector<16x16xf32>
    %126 = arith.addf %125, %5 : vector<16x16xf32>
    %cst_56 = arith.constant dense<0xFF800000> : vector<16xf32>
    %127 = vector.multi_reduction <maximumf>, %126, %cst_56 [1] : vector<16x16xf32> to vector<16xf32>
    %128 = vector.shape_cast %127 : vector<16xf32> to vector<16x1xf32>
    %129 = vector.broadcast %128 : vector<16x1xf32> to vector<16x16xf32>
    %130 = arith.subf %126, %129 : vector<16x16xf32>
    %131 = math.exp %130 : vector<16x16xf32>
    %132 = arith.mulf %0, %131 : vector<16x16xf32>
    %cst_57 = arith.constant dense<0.000000e+00> : vector<16xf32>
    %133 = vector.multi_reduction <add>, %132, %cst_57 [1] : vector<16x16xf32> to vector<16xf32>
    %134 = vector.shape_cast %133 : vector<16xf32> to vector<16x1xf32>
    %135 = tpu.reciprocal %134 {approx = true} : vector<16x1xf32> -> vector<16x1xf32>
    %136 = vector.broadcast %135 : vector<16x1xf32> to vector<16x16xf32>
    %137 = arith.mulf %132, %136 : vector<16x16xf32>
    %138 = arith.truncf %137 : vector<16x16xf32> to vector<16x16xbf16>
    %139 = arith.truncf %110 : vector<16x32xf32> to vector<16x32xbf16>
    %cst_58 = arith.constant dense<0.000000e+00> : vector<16x32xf32>
    %140 = tpu.matmul %138, %139, %cst_58 {dimension_numbers = #tpu.dot_dimension_numbers<[1], [0], [0], [1], [0, 0, 1, 1], [], []>} : vector<16x16xbf16>, vector<16x32xbf16>, vector<16x32xf32> -> vector<16x32xf32>
    %c0_59 = arith.constant 0 : index
    %c0_60 = arith.constant 0 : index
    %141 = vector.load %arg14[%c0_59, %c0_60] : memref<1x32xf32, #tpu.memory_space<vmem>>, vector<1x32xf32>
    %142 = vector.broadcast %141 : vector<1x32xf32> to vector<16x32xf32>
    %143 = arith.addf %140, %142 : vector<16x32xf32>
    %cst_61 = arith.constant 5.000000e-01 : f32
    %144 = vector.broadcast %cst_61 : f32 to vector<16x32xf32>
    %145 = arith.mulf %144, %143 : vector<16x32xf32>
    %cst_62 = arith.constant 4.471500e-02 : f32
    %146 = vector.broadcast %cst_62 : f32 to vector<16x32xf32>
    %147 = arith.mulf %146, %143 : vector<16x32xf32>
    %148 = arith.mulf %147, %143 : vector<16x32xf32>
    %149 = arith.mulf %148, %143 : vector<16x32xf32>
    %150 = arith.addf %143, %149 : vector<16x32xf32>
    %cst_63 = arith.constant 0.797884583 : f32
    %151 = vector.broadcast %cst_63 : f32 to vector<16x32xf32>
    %152 = arith.mulf %151, %150 : vector<16x32xf32>
    %153 = math.tanh %152 : vector<16x32xf32>
    %cst_64 = arith.constant 1.000000e+00 : f32
    %154 = vector.broadcast %cst_64 : f32 to vector<16x32xf32>
    %155 = arith.addf %154, %153 : vector<16x32xf32>
    %156 = arith.mulf %145, %155 : vector<16x32xf32>
    %c0_65 = arith.constant 0 : index
    %c0_66 = arith.constant 0 : index
    %157 = vector.load %arg15[%c0_65, %c0_66] : memref<16x32xf32, #tpu.memory_space<vmem>>, vector<16x32xf32>
    tpu.vector_store %arg15[%c0_65, %c0_66], %156 {strides = array<i32>} : memref<16x32xf32, #tpu.memory_space<vmem>>, vector<16x32xf32>,
    return
  }
  func.func @transform_0(%arg0: i32) -> (i32, i32) {
    %c0_i32 = arith.constant 0 : i32
    %c0_i32_0 = arith.constant 0 : i32
    %c0_i32_1 = arith.constant 0 : i32
    return %c0_i32, %c0_i32_0 : i32, i32
  }
  func.func @transform_1(%arg0: i32) -> (i32, i32) {
    %c0_i32 = arith.constant 0 : i32
    %c0_i32_0 = arith.constant 0 : i32
    %c0_i32_1 = arith.constant 0 : i32
    return %c0_i32, %c0_i32_0 : i32, i32
  }
  func.func @transform_2(%arg0: i32) -> (i32, i32) {
    %c0_i32 = arith.constant 0 : i32
    %c0_i32_0 = arith.constant 0 : i32
    %c0_i32_1 = arith.constant 0 : i32
    return %c0_i32, %c0_i32_0 : i32, i32
  }
  func.func @transform_3(%arg0: i32) -> (i32, i32) {
    %c0_i32 = arith.constant 0 : i32
    %c0_i32_0 = arith.constant 0 : i32
    %c0_i32_1 = arith.constant 0 : i32
    return %c0_i32, %c0_i32_0 : i32, i32
  }
  func.func @transform_4(%arg0: i32) -> (i32, i32) {
    %c0_i32 = arith.constant 0 : i32
    %c0_i32_0 = arith.constant 0 : i32
    %c0_i32_1 = arith.constant 0 : i32
    return %c0_i32, %c0_i32_0 : i32, i32
  }
  func.func @transform_5(%arg0: i32) -> (i32, i32) {
    %c0_i32 = arith.constant 0 : i32
    %c0_i32_0 = arith.constant 0 : i32
    %c0_i32_1 = arith.constant 0 : i32
    return %c0_i32, %c0_i32_0 : i32, i32
  }
  func.func @transform_6(%arg0: i32) -> (i32, i32) {
    %c0_i32 = arith.constant 0 : i32
    %c0_i32_0 = arith.constant 0 : i32
    %c0_i32_1 = arith.constant 0 : i32
    return %c0_i32, %c0_i32_0 : i32, i32
  }
  func.func @transform_7(%arg0: i32) -> (i32, i32) {
    %c0_i32 = arith.constant 0 : i32
    %c0_i32_0 = arith.constant 0 : i32
    %c0_i32_1 = arith.constant 0 : i32
    return %c0_i32, %c0_i32_0 : i32, i32
  }
  func.func @transform_8(%arg0: i32) -> (i32, i32) {
    %c0_i32 = arith.constant 0 : i32
    %c0_i32_0 = arith.constant 0 : i32
    %c0_i32_1 = arith.constant 0 : i32
    return %c0_i32, %c0_i32_0 : i32, i32
  }
  func.func @transform_9(%arg0: i32) -> (i32, i32) {
    %c0_i32 = arith.constant 0 : i32
    %c0_i32_0 = arith.constant 0 : i32
    %c0_i32_1 = arith.constant 0 : i32
    return %c0_i32, %c0_i32_0 : i32, i32
  }
  func.func @transform_10(%arg0: i32) -> (i32, i32) {
    %c0_i32 = arith.constant 0 : i32
    %c0_i32_0 = arith.constant 0 : i32
    %c0_i32_1 = arith.constant 0 : i32
    return %c0_i32, %c0_i32_0 : i32, i32
  }
  func.func @transform_11(%arg0: i32) -> (i32, i32) {
    %c0_i32 = arith.constant 0 : i32
    %c0_i32_0 = arith.constant 0 : i32
    %c0_i32_1 = arith.constant 0 : i32
    return %c0_i32, %c0_i32_0 : i32, i32
  }
  func.func @transform_12(%arg0: i32) -> (i32, i32) {
    %c0_i32 = arith.constant 0 : i32
    %c0_i32_0 = arith.constant 0 : i32
    %c0_i32_1 = arith.constant 0 : i32
    return %c0_i32, %c0_i32_0 : i32, i32
  }
  func.func @transform_13(%arg0: i32) -> (i32, i32) {
    %c0_i32 = arith.constant 0 : i32
    %c0_i32_0 = arith.constant 0 : i32
    %c0_i32_1 = arith.constant 0 : i32
    return %c0_i32, %c0_i32_0 : i32, i32
  }
  func.func @transform_14(%arg0: i32) -> (i32, i32) {
    %c0_i32 = arith.constant 0 : i32
    %c0_i32_0 = arith.constant 0 : i32
    %c0_i32_1 = arith.constant 0 : i32
    return %c0_i32, %c0_i32_0 : i32, i32
  }
}

</mosaic_0001>

<bundles_post_ra>
// kernel: tpu_custom_call.1
= control target key start
LH: loop header
LB: loop body
LE: loop exit
PB: predicated region body
PF: predicated region fallthrough
CT: control target
= control target key end

     0   :  { %19 = vsyncpa [#allocation3], 0  ;;  %s1380_s0 = inlined_call_operand.hbm [shape: f32[16,16], index: 0, kind: input, shape index: {}]   ;;  %s1381_s1 = inlined_call_operand.vmem [shape: f32[16,8], index: 1, kind: input, shape index: {}]   ;;  %s1382_s2 = inlined_call_operand.vmem [shape: f32[8,32], index: 2, kind: input, shape index: {}]   ;;  %s1383_s3 = inlined_call_operand.vmem [shape: f32[1,32], index: 3, kind: input, shape index: {}]   ;;  %s1384_s4 = inlined_call_operand.vmem [shape: f32[1,32], index: 4, kind: input, shape index: {}]   ;;  %s1385_s5 = inlined_call_operand.vmem [shape: f32[1,32], index: 5, kind: input, shape index: {}]   ;;  %s1386_s6 = inlined_call_operand.vmem [shape: f32[32,32], index: 6, kind: input, shape index: {}]   ;;  %s1387_s7 = inlined_call_operand.vmem [shape: f32[1,32], index: 7, kind: input, shape index: {}]   ;;  %s1388_s8 = inlined_call_operand.vmem [shape: f32[1,32], index: 8, kind: input, shape index: {}]   ;;  %s1389_s9 = inlined_call_operand.vmem [shape: f32[1,32], index: 9, kind: input, shape index: {}]   ;;  %s1390_s10 = inlined_call_operand.hbm [shape: f32[32,32], index: 10, kind: input, shape index: {}]   ;;  %s1391_s11 = inlined_call_operand.vmem [shape: f32[1,32], index: 11, kind: input, shape index: {}]   ;;  %s1392_s12 = inlined_call_operand.vmem [shape: f32[1,32], index: 12, kind: input, shape index: {}]   ;;  %s1393_s13 = inlined_call_operand.vmem [shape: f32[1,32], index: 13, kind: input, shape index: {}]   ;;  %s1394_s14 = inlined_call_operand.hbm [shape: f32[16,32], index: 14, kind: output, shape index: {}]  }
   0x1   :  { %20 = vsyncpa [#allocation6], 0 }
   0x2   :  { %21 = vsyncpa [#allocation4], 0  ;;  %s1107_s29 = smov [#allocation2]   ;;  %s1035_s17 = scalar_lea.hbm %s1380_s0, 256 }
   0x3   :  { %s27_s30 = sshll.u32 %s1107_s29, 4  ;;  %p1036_p0 = scmp.ne.s32.totalorder %s1380_s0, %s1035_s17  ;;  %s28_s30 = int_to_ptr.vmem [resolvable:$true] %s27_s30 }
   0x4   :  { %p1039_p1 = scmp.lt.u32.totalorder %s1035_s17, %s1380_s0 }
   0x6   :  { %p1041_p2 = pnand %p1039_p1, %p1036_p0 }
   0x8   :  { %1044 = shalt.err (!%p1041_p2)
}
   0x9   :  { %s1045_s22 = scalar_lea.vmem %s28_s30, 256  ;;  %p1050_p4 = scmp.lt.s32.totalorder %s28_s30, %s28_s30 }
   0xa   :  { %p1046_p3 = scmp.ne.s32.totalorder %s28_s30, %s1045_s22  ;;  %p1051_p5 = scmp.lt.s32.totalorder %s1045_s22, %s1045_s22 }
   0xc   :  { %p1052_p6 = por %p1051_p5, %p1050_p4 }
   0xe   :  { %p1053_p7 = pnand %p1052_p6, %p1046_p3 }
  0x10   :  { %1056 = shalt.err (!%p1053_p7)
}
  0x11   :  { %s1108_s23 = smov 128   ;;  %s1109_s24 = smov 8  }
  0x12   :  { %33 = dma.hbm_to_vmem [thread:$0]  %s1380_s0, 256, %s28_s30, [#allocation3], %s1108_s23, %s1108_s23, %s1109_s24  }
  0x13   :  { %s1110_s27 = smov [#allocation5]   ;;  %s1057_s16 = scalar_lea.hbm %s1390_s10, 512 }
  0x14   :  { %s57_s28 = sshll.u32 %s1110_s27, 4  ;;  %p1058_p8 = scmp.ne.s32.totalorder %s1390_s10, %s1057_s16  ;;  %s58_s28 = int_to_ptr.vmem [resolvable:$true] %s57_s28 }
  0x15   :  { %p1061_p9 = scmp.lt.u32.totalorder %s1057_s16, %s1390_s10 }
  0x17   :  { %p1063_p10 = pnand %p1061_p9, %p1058_p8 }
  0x19   :  { %1066 = shalt.err (!%p1063_p10)
}
  0x1a   :  { %s1067_s21 = scalar_lea.vmem %s58_s28, 512  ;;  %p1072_p12 = scmp.lt.s32.totalorder %s58_s28, %s58_s28 }
  0x1b   :  { %p1068_p11 = scmp.ne.s32.totalorder %s58_s28, %s1067_s21  ;;  %p1073_p13 = scmp.lt.s32.totalorder %s1067_s21, %s1067_s21 }
  0x1d   :  { %p1074_p0 = por %p1073_p13, %p1072_p12 }
  0x1f   :  { %p1075_p1 = pnand %p1074_p0, %p1068_p11 }
  0x21   :  { %1078 = shalt.err (!%p1075_p1)
}
  0x22   :  { %63 = dma.hbm_to_vmem [thread:$0]  %s1390_s10, 512, %s58_s28, [#allocation6], %s1108_s23, %s1108_s23, %s1109_s24  }
  0x23   :  { %1101 = dma.done.wait [#allocation3], 256  }
  0x24   :  { %1102 = vsyncadd [#allocation3], 4294967040 }
  0x25   :  { %1103 = dma.done.wait [#allocation6], 512  }
  0x26   :  { %1104 = vsyncadd [#allocation6], 4294966784  ;;  %v1111_v0 = vmov 0.0   ;;  %vm1112_vm0 = vmmov 0   ;;  %v86_v1 = vld [vmem:[%s1382_s2] sm:$0xff]  ;;  %vm92_vm1 = vcmask 1043456   ;;  %v233_v20 = vlaneseq }
  0x27   :  { %917 = vmatprep.subr.bf16.mxu0 %v1111_v0  ;;  %919 = vmatprep.mubr.msk.bf16.mxu0 %vm1112_vm0, %v1111_v0  ;;  %v83_v2 = vld [vmem:[%s1381_s1] sm:$0xff]  ;;  %v84_v3 = vld [vmem:[%s1381_s1 + $0x8] sm:$0xff]  ;;  %v87_v4 = vpack.c.bf16 %v86_v1, %v86_v1  ;;  %vm88_vm2 = vcmask 64512   ;;  %v1113_v7 = vmov 0.0|0.0   ;;  %vm146_vm3 = vcmask 261120   ;;  %v346_v1 = vld [vmem:[%s1386_s6 + $0x10] sm:$0xff] }
  0x28   :  { %927 = vmatprep.mubr.msk.f32.mxu1 %vm1112_vm0, %v1111_v0  ;;  %v85_v6 = vpack.c.bf16 %v84_v3, %v83_v2  ;;  %978 = vmatprep.subr.bf16.mxu1 %v1113_v7  ;;  %v874_v8 = vld [vmem:[%s1384_s4] ss:$0 sm:$0xff]  ;;  %vm1244_vm4 = vmpackc.low %vm146_vm3, %vm146_vm3  ;;  %v234_v21 = vshrl.u32 %v233_v20, 7  ;;  %v1266_v28 = vld [vmem:[#allocation2 + $0x8] sm:$0xff]  ;;  %v1114_v32 = vmov -1e+30  }
  0x29   :  { %v94_v5 = vsel %vm92_vm1, %v87_v4, 0  ;;  %v153_v19 = vld [vmem:[%s1383_s3] sm:$0x1]  ;;  %vm80_vm6 = vcmp.gt.f32.partialorder %v1266_v28, 0.0  ;;  %vm247_vm9 = vcmask 130048   ;;  %v345_v63 = vld [vmem:[%s1386_s6 + $0x8] sm:$0xff] }
  0x2a   :  { %918 = vmatpush3.bf16.msra.mxu0 %v94_v5  ;;  %v1260_v23 = vsub.s32 0, %v234_v21  ;;  %v1262_v24 = vld [vmem:[#allocation2] sm:$0xff]  ;;  %v1271_v37 = vsel %vm80_vm6, 0.0, %v1114_v32  ;;  %v347_v3 = vld [vmem:[%s1386_s6 + $0x18] sm:$0xff] }
  0x2b   :  { %930 = vmatprep.subr.bf16.mxu0 %v1111_v0  ;;  %vm79_vm5 = vcmp.gt.f32.partialorder %v1262_v24, 0.0  ;;  %v344_v62 = vld [vmem:[%s1386_s6] sm:$0xff]  ;;  %v349_v4 = vpack.c.bf16 %v347_v3, %v346_v1 }
  0x2c   :  { %v1268_v33 = vsel %vm79_vm5, 0.0, %v1114_v32  ;;  %v348_v2 = vpack.c.bf16 %v345_v63, %v344_v62  ;;  %v878_v5 = vld [vmem:[%s1385_s5] ss:$0 sm:$0xff] }
  0x2d   :  { %920 = vmatmul.mubr.msk.bf16.vlgmr.msra.gmra.mrb[0].mxu0 %vm88_vm2, %v85_v6 }
  0x2e   :  { %932 = vmatprep.mubr.msk.bf16.mxu0 %vm1112_vm0, %v1111_v0 }
 0x100   :  { %v130_v9 = vpop.f32.mrb[0].mxu0 }
 0x101   :  { %v921_v10 = vpop.f32.mrb[1].mxu0  ;;  %v144_v11 = vmul.f32 %v874_v8, %v130_v9 }
 0x102   :  { %v133_v12 = vpop.f32.mrb[2].mxu0 }
 0x103   :  { %v145_v14 = vmul.f32 %v874_v8, %v133_v12  ;;  %v979_v15 = vpack.c.bf16 %v133_v12, %v130_v9  ;;  %v922_v16 = vpop.f32.mrb[3].mxu0  ;;  %v147_v17 = vsel %vm146_vm3, %v144_v11, 0.0 }
 0x104   :  { %148 = vadd.xlane.f32.xlu0 %v147_v17 }
 0x105   :  { %981 = vmatpush3.bf16.xpose.msk.msra.mxu1 %vm1244_vm4, %v979_v15  ;;  %931 = vmatpush3.bf16.msra.mxu0 %v979_v15  ;;  %v150_v18 = vsel %vm146_vm3, %v145_v14, 0.0 }
 0x106   :  { %936 = vmatprep.subr.bf16.mxu1 %v1111_v0  ;;  %982 = vmatprep.subr.bf16.mxu0 %v1113_v7 }
 0x108   :  { %151 = vadd.xlane.f32.xlu0 %v150_v18 }
 0x10c   :  { %928 = vmatmul.mubr.msk.f32.vlgmr.msra.gmra.mrb[0].mxu1 %vm146_vm3, %v153_v19 }
 0x10d   :  { %940 = vmatprep.mubr.msk.bf16.mxu1 %vm1112_vm0, %v1111_v0  ;;  %937 = vmatpush3.bf16.msra.mxu1 %v348_v2 }
 0x10e   :  { %938 = vmatprep.subr.bf16.mxu1 %v1111_v0 }
 0x111   :  { %939 = vmatpush3.bf16.msra.mxu1 %v349_v4 }
 0x112   :  { %957 = vmatprep.subr.bf16.mxu1 %v1111_v0 }
 0x191   :  { %v149_v22 = vpop.xlane.xlu0 %148 }
 0x195   :  { %v152_v29 = vpop.xlane.xlu0 %151 }
 0x1df   :  { %v229_v25 = vpop.f32.mrb[0].mxu1 }
 0x1e0   :  { %v236_v26 = vrot.slane %v229_v25, %v1260_v23  ;;  %v929_v27 = vpop.f32.mrb[1].mxu1 }
 0x1e2   :  { %v237_v30 = vadd.f32 %v236_v26, %v149_v22  ;;  %v238_v31 = vadd.f32 %v236_v26, %v152_v29 }
 0x1e4   :  { %v241_v34 = vmul.f32 0.2, %v237_v30  ;;  %v242_v35 = vmul.f32 0.2, %v238_v31  ;;  %vm239_vm7 = vcmp.ge.f32.partialorder %v237_v30, 0.0  ;;  %vm240_vm8 = vcmp.ge.f32.partialorder %v238_v31, 0.0 }
 0x1e6   :  { %v243_v36 = vsel %vm239_vm7, %v237_v30, %v241_v34  ;;  %v244_v38 = vsel %vm240_vm8, %v238_v31, %v242_v35 }
 0x1e7   :  { %v245_v39 = vadd.f32 %v243_v36, %v1268_v33  ;;  %v246_v41 = vadd.f32 %v244_v38, %v1271_v37  ;;  %v881_v38 = vld [vmem:[%s1388_s8] ss:$0 sm:$0xff] }
 0x1e9   :  { %v248_v40 = vsel %vm247_vm9, %v245_v39, -inf  ;;  %v251_v42 = vsel %vm247_vm9, %v246_v41, -inf }
 0x1ea   :  { %249 = vmax.xlane.f32.xlu1 %v248_v40 }
 0x1ee   :  { %252 = vmax.xlane.f32.xlu1 %v251_v42 }
 0x277   :  { %v250_v43 = vpop.xlane.xlu1 %249 }
 0x278   :  { %v254_v44 = vsub.f32 %v245_v39, %v250_v43 }
 0x27a   :  { %v256_v45 = vmul.f32 1.442695, %v254_v44 }
 0x27b   :  { %v253_v46 = vpop.xlane.xlu1 %252 }
 0x27c   :  { %999 = vpow2.f32 %v256_v45  ;;  %v255_v47 = vsub.f32 %v246_v41, %v253_v46 }
 0x27e   :  { %v258_v48 = vmul.f32 1.442695, %v255_v47 }
 0x280   :  { %1001 = vpow2.f32 %v258_v48  ;;  %v409_v48 = vld [vmem:[%s1387_s7] sm:$0x1] }
 0x286   :  { %v1000_v49 = vpop.eup %999 }
 0x287   :  { %v260_v50 = vmul.f32 %v1000_v49, %v1262_v24 }
 0x289   :  { %v262_v51 = vsel %vm247_vm9, %v260_v50, 0.0 }
 0x28a   :  { %v1002_v52 = vpop.eup %1001  ;;  %263 = vadd.xlane.f32.xlu0 %v262_v51 }
 0x28b   :  { %v261_v53 = vmul.f32 %v1002_v52, %v1266_v28 }
 0x28d   :  { %v265_v54 = vsel %vm247_vm9, %v261_v53, 0.0 }
 0x28e   :  { %266 = vadd.xlane.f32.xlu1 %v265_v54 }
 0x317   :  { %v264_v55 = vpop.xlane.xlu0 %263 }
 0x318   :  { %1003 = vrcp.f32 %v264_v55 }
 0x31b   :  { %v267_v56 = vpop.xlane.xlu1 %266 }
 0x31c   :  { %1005 = vrcp.f32 %v267_v56 }
 0x322   :  { %v1004_v57 = vpop.eup %1003 }
 0x323   :  { %v270_v59 = vmul.f32 %v1004_v57, %v260_v50 }
 0x326   :  { %v1006_v58 = vpop.eup %1005 }
 0x327   :  { %v271_v60 = vmul.f32 %v1006_v58, %v261_v53 }
 0x329   :  { %v272_v61 = vpack.c.bf16 %v271_v60, %v270_v59 }
 0x32b   :  { %933 = vmatmul.mubr.msk.bf16.vlgmr.msra.gmra.mrb[4].mxu0 %vm247_vm9, %v272_v61 }
 0x32c   :  { %948 = vmatprep.mubr.msk.f32.mxu0 %vm1112_vm0, %v1111_v0 }
 0x3fe   :  { %v318_v6 = vpop.f32.mrb[4].mxu0 }
 0x3ff   :  { %v319_v8 = vadd.f32 %v878_v5, %v318_v6  ;;  %v934_v9 = vpop.f32.mrb[5].mxu0 }
 0x400   :  { %v321_v10 = vpop.f32.mrb[6].mxu0 }
 0x401   :  { %v327_v11 = vmul.f32 0.044715, %v319_v8  ;;  %v322_v12 = vadd.f32 %v878_v5, %v321_v10  ;;  %v935_v14 = vpop.f32.mrb[7].mxu0  ;;  %v325_v30 = vmul.f32 0.5, %v319_v8 }
 0x403   :  { %v329_v15 = vmul.f32 %v327_v11, %v319_v8  ;;  %v328_v16 = vmul.f32 0.044715, %v322_v12  ;;  %v326_v31 = vmul.f32 0.5, %v322_v12 }
 0x405   :  { %v331_v17 = vmul.f32 %v329_v15, %v319_v8  ;;  %v330_v18 = vmul.f32 %v328_v16, %v322_v12 }
 0x407   :  { %v333_v19 = vadd.f32 %v331_v17, %v319_v8  ;;  %v332_v20 = vmul.f32 %v330_v18, %v322_v12 }
 0x409   :  { %v335_v21 = vmul.f32 0.7978846, %v333_v19  ;;  %v334_v22 = vadd.f32 %v332_v20, %v322_v12 }
 0x40b   :  { %1007 = vtanh.f32 %v335_v21  ;;  %v336_v25 = vmul.f32 0.7978846, %v334_v22  ;;  %v599_v21 = vld [vmem:[#allocation5] sm:$0xff]  ;;  %v600_v22 = vld [vmem:[#allocation5 + $0x8] sm:$0xff] }
 0x40d   :  { %1009 = vtanh.f32 %v336_v25  ;;  %v601_v25 = vld [vmem:[#allocation5 + $0x10] sm:$0xff] }
 0x415   :  { %v1008_v26 = vpop.eup %1007 }
 0x416   :  { %v339_v27 = vadd.f32 1.0, %v1008_v26  ;;  %v603_v26 = vpack.c.bf16 %v600_v22, %v599_v21 }
 0x417   :  { %v1010_v29 = vpop.eup %1009 }
 0x418   :  { %v340_v32 = vadd.f32 1.0, %v1010_v29  ;;  %v341_v34 = vmul.f32 %v339_v27, %v325_v30  ;;  %v602_v27 = vld [vmem:[#allocation5 + $0x18] sm:$0xff]  ;;  %v885_v30 = vld [vmem:[%s1389_s9] ss:$0 sm:$0xff] }
 0x419   :  { %v604_v29 = vpack.c.bf16 %v602_v27, %v601_v25 }
 0x41a   :  { %v342_v35 = vmul.f32 %v340_v32, %v326_v31 }
 0x41c   :  { %v343_v36 = vpack.c.bf16 %v342_v35, %v341_v34 }
 0x41e   :  { %941 = vmatmul.mubr.msk.bf16.vlgmr.msra.gmra.mrb[4].mxu1 %vm146_vm3, %v343_v36 }
 0x41f   :  { %961 = vmatprep.mubr.msk.bf16.mxu1 %vm1112_vm0, %v1111_v0  ;;  %958 = vmatpush3.bf16.msra.mxu1 %v603_v26 }
 0x420   :  { %959 = vmatprep.subr.bf16.mxu1 %v1111_v0 }
 0x423   :  { %960 = vmatpush3.bf16.msra.mxu1 %v604_v29 }
 0x424   :  { %972 = vmatprep.subr.bf16.mxu1 %v1111_v0 }
 0x4f1   :  { %v387_v39 = vpop.f32.mrb[4].mxu1 }
 0x4f2   :  { %v401_v40 = vmul.f32 %v881_v38, %v387_v39  ;;  %v942_v41 = vpop.f32.mrb[5].mxu1 }
 0x4f3   :  { %v390_v42 = vpop.f32.mrb[6].mxu1 }
 0x4f4   :  { %v402_v43 = vmul.f32 %v881_v38, %v390_v42  ;;  %v983_v44 = vpack.c.bf16 %v390_v42, %v387_v39  ;;  %v943_v45 = vpop.f32.mrb[7].mxu1  ;;  %v403_v46 = vsel %vm146_vm3, %v401_v40, 0.0 }
 0x4f5   :  { %404 = vadd.xlane.f32.xlu0 %v403_v46 }
 0x4f6   :  { %985 = vmatpush3.bf16.xpose.msk.msra.mxu0 %vm1244_vm4, %v983_v44  ;;  %v406_v47 = vsel %vm146_vm3, %v402_v43, 0.0 }
 0x4f7   :  { %407 = vadd.xlane.f32.xlu1 %v406_v47  ;;  %951 = vmatprep.subr.bf16.mxu0 %v1111_v0 }
 0x4fd   :  { %949 = vmatmul.mubr.msk.f32.vlgmr.msra.gmra.mrb[8].mxu0 %vm146_vm3, %v409_v48 }
 0x4fe   :  { %952 = vmatpush3.bf16.msra.mxu0 %v983_v44  ;;  %953 = vmatprep.mubr.msk.bf16.mxu0 %vm1112_vm0, %v1111_v0 }
 0x4ff   :  { %986 = vmatprep.subr.bf16.mxu0 %v1113_v7 }
 0x582   :  { %v405_v52 = vpop.xlane.xlu0 %404 }
 0x584   :  { %v408_v53 = vpop.xlane.xlu1 %407 }
 0x5d0   :  { %v485_v49 = vpop.f32.mrb[8].mxu0 }
 0x5d1   :  { %v492_v50 = vrot.slane %v485_v49, %v1260_v23  ;;  %v950_v51 = vpop.f32.mrb[9].mxu0 }
 0x5d3   :  { %v493_v54 = vadd.f32 %v492_v50, %v405_v52  ;;  %v494_v55 = vadd.f32 %v492_v50, %v408_v53 }
 0x5d5   :  { %v497_v56 = vmul.f32 0.2, %v493_v54  ;;  %v498_v57 = vmul.f32 0.2, %v494_v55  ;;  %vm496_vm10 = vcmp.ge.f32.partialorder %v494_v55, 0.0  ;;  %vm495_vm11 = vcmp.ge.f32.partialorder %v493_v54, 0.0 }
 0x5d7   :  { %v500_v58 = vsel %vm496_vm10, %v494_v55, %v498_v57  ;;  %v499_v59 = vsel %vm495_vm11, %v493_v54, %v497_v56 }
 0x5d8   :  { %v502_v60 = vadd.f32 %v500_v58, %v1271_v37  ;;  %v501_v61 = vadd.f32 %v499_v59, %v1268_v33  ;;  %v888_v58 = vld [vmem:[%s1392_s12] ss:$0 sm:$0xff] }
 0x5da   :  { %v506_v7 = vsel %vm247_vm9, %v502_v60, -inf  ;;  %v503_v62 = vsel %vm247_vm9, %v501_v61, -inf }
 0x5db   :  { %507 = vmax.xlane.f32.xlu1 %v506_v7  ;;  %504 = vmax.xlane.f32.xlu0 %v503_v62 }
 0x668   :  { %v508_v63 = vpop.xlane.xlu1 %507  ;;  %v505_v1 = vpop.xlane.xlu0 %504 }
 0x669   :  { %v510_v2 = vsub.f32 %v502_v60, %v508_v63  ;;  %v509_v3 = vsub.f32 %v501_v61, %v505_v1 }
 0x66b   :  { %v513_v4 = vmul.f32 1.442695, %v510_v2  ;;  %v511_v5 = vmul.f32 1.442695, %v509_v3  ;;  %v664_v3 = vld [vmem:[%s1391_s11] sm:$0x1] }
 0x66d   :  { %1011 = vpow2.f32 %v513_v4 }
 0x66e   :  { %1013 = vpow2.f32 %v511_v5 }
 0x677   :  { %v1012_v6 = vpop.eup %1011 }
 0x678   :  { %v1014_v8 = vpop.eup %1013  ;;  %v516_v9 = vmul.f32 %v1012_v6, %v1266_v28 }
 0x679   :  { %v515_v10 = vmul.f32 %v1014_v8, %v1262_v24 }
 0x67a   :  { %v520_v11 = vsel %vm247_vm9, %v516_v9, 0.0 }
 0x67b   :  { %521 = vadd.xlane.f32.xlu1 %v520_v11  ;;  %v517_v12 = vsel %vm247_vm9, %v515_v10, 0.0 }
 0x67c   :  { %518 = vadd.xlane.f32.xlu0 %v517_v12 }
 0x708   :  { %v522_v14 = vpop.xlane.xlu1 %521 }
 0x709   :  { %1015 = vrcp.f32 %v522_v14  ;;  %v519_v15 = vpop.xlane.xlu0 %518 }
 0x70a   :  { %1017 = vrcp.f32 %v519_v15 }
 0x713   :  { %v1016_v16 = vpop.eup %1015 }
 0x714   :  { %v1018_v17 = vpop.eup %1017  ;;  %v526_v18 = vmul.f32 %v1016_v16, %v516_v9 }
 0x715   :  { %v525_v19 = vmul.f32 %v1018_v17, %v515_v10 }
 0x717   :  { %v527_v20 = vpack.c.bf16 %v526_v18, %v525_v19 }
 0x719   :  { %954 = vmatmul.mubr.msk.bf16.vlgmr.msra.gmra.mrb[12].mxu0 %vm247_vm9, %v527_v20 }
 0x71a   :  { %969 = vmatprep.mubr.msk.f32.mxu0 %vm1112_vm0, %v1111_v0 }
 0x7ec   :  { %v573_v31 = vpop.f32.mrb[12].mxu0 }
 0x7ed   :  { %v574_v32 = vadd.f32 %v885_v30, %v573_v31  ;;  %v955_v34 = vpop.f32.mrb[13].mxu0 }
 0x7ee   :  { %v576_v35 = vpop.f32.mrb[14].mxu0 }
 0x7ef   :  { %v582_v36 = vmul.f32 0.044715, %v574_v32  ;;  %v577_v38 = vadd.f32 %v885_v30, %v576_v35  ;;  %v956_v39 = vpop.f32.mrb[15].mxu0  ;;  %v580_v52 = vmul.f32 0.5, %v574_v32 }
 0x7f1   :  { %v584_v40 = vmul.f32 %v582_v36, %v574_v32  ;;  %v583_v41 = vmul.f32 0.044715, %v577_v38  ;;  %v581_v53 = vmul.f32 0.5, %v577_v38 }
 0x7f3   :  { %v586_v42 = vmul.f32 %v584_v40, %v574_v32  ;;  %v585_v43 = vmul.f32 %v583_v41, %v577_v38 }
 0x7f5   :  { %v588_v44 = vadd.f32 %v586_v42, %v574_v32  ;;  %v587_v45 = vmul.f32 %v585_v43, %v577_v38 }
 0x7f7   :  { %v590_v46 = vmul.f32 0.7978846, %v588_v44  ;;  %v589_v47 = vadd.f32 %v587_v45, %v577_v38 }
 0x7f9   :  { %1019 = vtanh.f32 %v590_v46  ;;  %v591_v48 = vmul.f32 0.7978846, %v589_v47 }
 0x7fb   :  { %1021 = vtanh.f32 %v591_v48 }
 0x803   :  { %v1020_v49 = vpop.eup %1019 }
 0x804   :  { %v594_v50 = vadd.f32 1.0, %v1020_v49 }
 0x805   :  { %v1022_v51 = vpop.eup %1021 }
 0x806   :  { %v595_v54 = vadd.f32 1.0, %v1022_v51  ;;  %v596_v55 = vmul.f32 %v594_v50, %v580_v52 }
 0x808   :  { %v597_v56 = vmul.f32 %v595_v54, %v581_v53 }
 0x80a   :  { %v598_v57 = vpack.c.bf16 %v597_v56, %v596_v55 }
 0x80c   :  { %962 = vmatmul.mubr.msk.bf16.vlgmr.msra.gmra.mrb[8].mxu1 %vm146_vm3, %v598_v57 }
 0x80d   :  { %974 = vmatprep.mubr.msk.bf16.mxu1 %vm1112_vm0, %v1111_v0 }
 0x8df   :  { %v642_v59 = vpop.f32.mrb[8].mxu1 }
 0x8e0   :  { %v656_v60 = vmul.f32 %v888_v58, %v642_v59  ;;  %v963_v61 = vpop.f32.mrb[9].mxu1 }
 0x8e1   :  { %v645_v7 = vpop.f32.mrb[10].mxu1 }
 0x8e2   :  { %v657_v62 = vmul.f32 %v888_v58, %v645_v7  ;;  %v987_v63 = vpack.c.bf16 %v645_v7, %v642_v59  ;;  %v964_v1 = vpop.f32.mrb[11].mxu1  ;;  %v658_v2 = vsel %vm146_vm3, %v656_v60, 0.0 }
 0x8e3   :  { %659 = vadd.xlane.f32.xlu0 %v658_v2 }
 0x8e4   :  { %989 = vmatpush3.bf16.xpose.msk.msra.mxu0 %vm1244_vm4, %v987_v63  ;;  %973 = vmatpush3.bf16.msra.mxu1 %v987_v63  ;;  %v661_v0 = vsel %vm146_vm3, %v657_v62, 0.0 }
 0x8e5   :  { %662 = vadd.xlane.f32.xlu1 %v661_v0 }
 0x8eb   :  { %970 = vmatmul.mubr.msk.f32.vlgmr.msra.gmra.mrb[10].mxu0 %vm146_vm3, %v664_v3 }
 0x970   :  { %v660_v8 = vpop.xlane.xlu0 %659 }
 0x972   :  { %v663_v9 = vpop.xlane.xlu1 %662 }
 0x9be   :  { %v740_v4 = vpop.f32.mrb[10].mxu0 }
 0x9bf   :  { %v747_v5 = vrot.slane %v740_v4, %v1260_v23  ;;  %v971_v6 = vpop.f32.mrb[11].mxu0 }
 0x9c1   :  { %v748_v10 = vadd.f32 %v747_v5, %v660_v8  ;;  %v749_v11 = vadd.f32 %v747_v5, %v663_v9 }
 0x9c3   :  { %v752_v13 = vmul.f32 0.2, %v748_v10  ;;  %v753_v12 = vmul.f32 0.2, %v749_v11  ;;  %vm751_vm12 = vcmp.ge.f32.partialorder %v749_v11, 0.0  ;;  %vm750_vm13 = vcmp.ge.f32.partialorder %v748_v10, 0.0 }
 0x9c5   :  { %v755_v14 = vsel %vm751_vm12, %v749_v11, %v753_v12  ;;  %v754_v15 = vsel %vm750_vm13, %v748_v10, %v752_v13 }
 0x9c6   :  { %v757_v16 = vadd.f32 %v755_v14, %v1271_v37  ;;  %v756_v17 = vadd.f32 %v754_v15, %v1268_v33 }
 0x9c8   :  { %v761_v18 = vsel %vm247_vm9, %v757_v16, -inf  ;;  %v758_v19 = vsel %vm247_vm9, %v756_v17, -inf }
 0x9c9   :  { %762 = vmax.xlane.f32.xlu1 %v761_v18  ;;  %759 = vmax.xlane.f32.xlu0 %v758_v19 }
 0xa56   :  { %v763_v23 = vpop.xlane.xlu1 %762  ;;  %v760_v20 = vpop.xlane.xlu0 %759 }
 0xa57   :  { %v765_v21 = vsub.f32 %v757_v16, %v763_v23  ;;  %v764_v22 = vsub.f32 %v756_v17, %v760_v20 }
 0xa59   :  { %v768_v25 = vmul.f32 1.442695, %v765_v21  ;;  %v766_v26 = vmul.f32 1.442695, %v764_v22 }
 0xa5b   :  { %1023 = vpow2.f32 %v768_v25 }
 0xa5c   :  { %1025 = vpow2.f32 %v766_v26 }
 0xa65   :  { %v1024_v27 = vpop.eup %1023 }
 0xa66   :  { %v1026_v29 = vpop.eup %1025  ;;  %v771_v37 = vmul.f32 %v1024_v27, %v1266_v28 }
 0xa67   :  { %v770_v33 = vmul.f32 %v1026_v29, %v1262_v24  ;;  %v892_v24 = vld [vmem:[%s1393_s13] ss:$0 sm:$0xff]  ;;  %s1115_s13 = smov [#allocation7]  }
 0xa68   :  { %v775_v30 = vsel %vm247_vm9, %v771_v37, 0.0  ;;  %s860_s28 = sshll.u32 %s1115_s13, 4  ;;  %s861_s28 = int_to_ptr.vmem [resolvable:$true] %s860_s28 }
 0xa69   :  { %776 = vadd.xlane.f32.xlu1 %v775_v30  ;;  %v772_v31 = vsel %vm247_vm9, %v770_v33, 0.0  ;;  %s1079_s2 = scalar_lea.vmem %s861_s28, 256  ;;  %p1084_p3 = scmp.lt.s32.totalorder %s861_s28, %s861_s28 }
 0xa6a   :  { %773 = vadd.xlane.f32.xlu0 %v772_v31  ;;  %p1080_p2 = scmp.ne.s32.totalorder %s861_s28, %s1079_s2  ;;  %p1085_p4 = scmp.lt.s32.totalorder %s1079_s2, %s1079_s2 }
 0xa6c   :  { %p1086_p5 = por %p1085_p4, %p1084_p3 }
 0xa6e   :  { %p1087_p6 = pnand %p1086_p5, %p1080_p2 }
 0xaf6   :  { %v777_v32 = vpop.xlane.xlu1 %776 }
 0xaf7   :  { %1027 = vrcp.f32 %v777_v32  ;;  %v774_v34 = vpop.xlane.xlu0 %773 }
 0xaf8   :  { %1029 = vrcp.f32 %v774_v34 }
 0xb01   :  { %v1028_v35 = vpop.eup %1027 }
 0xb02   :  { %v1030_v36 = vpop.eup %1029  ;;  %v781_v38 = vmul.f32 %v1028_v35, %v771_v37 }
 0xb03   :  { %v780_v39 = vmul.f32 %v1030_v36, %v770_v33 }
 0xb05   :  { %v782_v40 = vpack.c.bf16 %v781_v38, %v780_v39 }
 0xb07   :  { %975 = vmatmul.mubr.msk.bf16.vlgmr.msra.gmra.mrb[12].mxu1 %vm247_vm9, %v782_v40 }
 0xbda   :  { %v828_v28 = vpop.f32.mrb[12].mxu1 }
 0xbdb   :  { %v829_v41 = vadd.f32 %v892_v24, %v828_v28  ;;  %v976_v42 = vpop.f32.mrb[13].mxu1 }
 0xbdc   :  { %v831_v43 = vpop.f32.mrb[14].mxu1 }
 0xbdd   :  { %v837_v44 = vmul.f32 0.044715, %v829_v41  ;;  %v832_v45 = vadd.f32 %v892_v24, %v831_v43  ;;  %v977_v46 = vpop.f32.mrb[15].mxu1  ;;  %v835_v57 = vmul.f32 0.5, %v829_v41 }
 0xbdf   :  { %v839_v47 = vmul.f32 %v837_v44, %v829_v41  ;;  %v838_v48 = vmul.f32 0.044715, %v832_v45  ;;  %v836_v60 = vmul.f32 0.5, %v832_v45 }
 0xbe1   :  { %v841_v49 = vmul.f32 %v839_v47, %v829_v41  ;;  %v840_v50 = vmul.f32 %v838_v48, %v832_v45 }
 0xbe3   :  { %v843_v51 = vadd.f32 %v841_v49, %v829_v41  ;;  %v842_v52 = vmul.f32 %v840_v50, %v832_v45 }
 0xbe5   :  { %v844_v53 = vadd.f32 %v842_v52, %v832_v45  ;;  %v845_v54 = vmul.f32 0.7978846, %v843_v51 }
 0xbe7   :  { %v846_v55 = vmul.f32 0.7978846, %v844_v53  ;;  %1031 = vtanh.f32 %v845_v54 }
 0xbe9   :  { %1033 = vtanh.f32 %v846_v55 }
 0xbf1   :  { %v1032_v56 = vpop.eup %1031 }
 0xbf2   :  { %v849_v58 = vadd.f32 1.0, %v1032_v56 }
 0xbf3   :  { %v1034_v59 = vpop.eup %1033 }
 0xbf4   :  { %v850_v61 = vadd.f32 1.0, %v1034_v59  ;;  %v851_v7 = vmul.f32 %v849_v58, %v835_v57 }
 0xbf6   :  { %v852_v62 = vmul.f32 %v850_v61, %v836_v60  ;;  %853 = vst.msk [vmem:[#allocation7] sm:$0xff] %vm146_vm3, %v851_v7 }
 0xbf8   :  { %854 = vst.msk [vmem:[#allocation7 + $0x8] sm:$0xff] %vm146_vm3, %v852_v62 }
 0xbf9   :  { %1090 = shalt.err (!%p1087_p6)
}
 0xbfa   :  { %s1091_s4 = scalar_lea.hbm %s1394_s14, 256 }
 0xbfb   :  { %p1092_p7 = scmp.ne.s32.totalorder %s1394_s14, %s1091_s4  ;;  %p1095_p8 = scmp.lt.u32.totalorder %s1091_s4, %s1394_s14 }
 0xbfd   :  { %p1097_p9 = pnand %p1095_p8, %p1092_p7 }
 0xbff   :  { %1100 = shalt.err (!%p1097_p9)
}
 0xc00   :  { %866 = dma.vmem_to_hbm [thread:$0]  %s861_s28, 256, %s1394_s14, [#allocation4], %s1108_s23, %s1108_s23, %s1109_s24  }
 0xc01   :  { %1105 = dma.done.wait [#allocation4], 256  }
 0xc02   :  { %1106 = vsyncadd [#allocation4], 4294967040 }
 0xc03   :  { %870 = vsyncpa [#allocation3], 1 }
 0xc04   :  { %871 = vsyncpa [#allocation6], 1 }
 0xc05   :  { %872 = vsyncpa [#allocation4], 1 }

</bundles_post_ra>
